<compile_context>
chip_gen: v5e
topology: v5e:2x2
jax: 0.10.0
libtpu: 0.0.40
codegen_flags: <defaults>
</compile_context>

<pallas_src>
import jax
import jax.numpy as jnp
from jax import lax
from jax.experimental import pallas as pl
from jax.experimental.pallas import tpu as pltpu


# ----------------------------------------------------------------------------
# Kernel 1: hoisted input projection — one matmul for the whole sequence
#   gx[t*B + b, :] = x[t, b, :] @ W_ih_t + (b_ih + b_hh)
# ----------------------------------------------------------------------------
def input_proj_kernel(x_ref,      # (T*B, D)  time-major flattened input
                      w_ih_ref,   # (D, 4H)
                      b_ref,      # (1, 4H)   b_ih + b_hh
                      gx_ref):    # (T*B, 4H)
    gx_ref[...] = (jnp.dot(x_ref[...], w_ih_ref[...],
                           preferred_element_type=jnp.float32)
                   + b_ref[...])


# ----------------------------------------------------------------------------
# Kernel 2: serial LSTM recurrence + Linear head on the last hidden state
# ----------------------------------------------------------------------------
def lstm_recurrence_kernel(gx_ref,     # (T, B, 4H) precomputed input gates
                           h0_ref,     # (B, H)
                           c0_ref,     # (B, H)
                           w_hh_ref,   # (H, 4H)
                           w_out_ref,  # (1, H)   linear head weight row
                           b_out_ref,  # (1, 1)
                           out_ref):   # (B, 1)
    T = gx_ref.shape[0]
    H = h0_ref.shape[-1]

    w_hh = w_hh_ref[...]   # hoisted load; resident across the unrolled loop

    def step(t, carry):
        h, c = carry
        # Only the serial part stays per-step: one (B,H)@(H,4H) MXU matmul.
        gates = gx_ref[t] + jnp.dot(h, w_hh, preferred_element_type=jnp.float32)  # (B, 4H)
        # Two full-vreg EUP ops instead of four narrow ones; slices are cheap selects.
        sig = jax.nn.sigmoid(gates)
        tan = jnp.tanh(gates)
        i = sig[:, 0 * H:1 * H]
        f = sig[:, 1 * H:2 * H]
        g = tan[:, 2 * H:3 * H]
        o = sig[:, 3 * H:4 * H]
        c_new = f * c + i * g
        h_new = o * jnp.tanh(c_new)
        return (h_new, c_new)

    # T is a compile-time constant; fully unroll so the scheduler sees all steps.
    h_last, _ = lax.fori_loop(0, T, step, (h0_ref[...], c0_ref[...]), unroll=True)

    # Linear head as a lane reduction (avoids a 1-column MXU fill/drain):
    # (B,H) * (1,H) -> sum over lanes -> (B,1), plus bias.
    out_ref[...] = (jnp.sum(h_last * w_out_ref[...], axis=-1, keepdims=True)
                    + b_out_ref[...])


# ----------------------------------------------------------------------------
# Wrapper
# ----------------------------------------------------------------------------
def lstm_forward(x, h0, c0, params):
    """x: (B, T, D) float32; h0/c0: (B, H); returns (B, 1)."""
    B, T, D = x.shape
    H = h0.shape[-1]

    vmem = pl.BlockSpec(memory_space=pltpu.MemorySpace.VMEM)

    # Layout plumbing only (no compute): time-major rows t*B + b.
    x_tm2d = jnp.transpose(x, (1, 0, 2)).reshape(T * B, D)

    # One lane-dense projection matmul for the whole sequence.
    gx2d = pl.pallas_call(
        input_proj_kernel,
        out_shape=jax.ShapeDtypeStruct((T * B, 4 * H), jnp.float32),
        in_specs=[vmem] * 3,
        out_specs=vmem,
    )(x_tm2d, params["w_ih_t"], params["b"])

    gx = gx2d.reshape(T, B, 4 * H)   # contiguous reshape -> time-major (T, B, 4H)

    out = pl.pallas_call(
        lstm_recurrence_kernel,
        out_shape=jax.ShapeDtypeStruct((B, 1), jnp.float32),
        in_specs=[vmem] * 6,
        out_specs=vmem,
    )(gx, h0, c0, params["w_hh_t"], params["w_out_row"], params["b_out"])
    return out


# ----------------------------------------------------------------------------
# Pure-JAX reference (mirrors PyTorch LSTM + Linear semantics)
# ----------------------------------------------------------------------------
def lstm_ref(x, h0, c0, p):
    B, T, D = x.shape
    H = h0.shape[-1]
    h, c = h0, c0
    for t in range(T):
        gates = x[:, t, :] @ p["w_ih_t"] + h @ p["w_hh_t"] + p["b"]
        i = jax.nn.sigmoid(gates[:, 0 * H:1 * H])
        f = jax.nn.sigmoid(gates[:, 1 * H:2 * H])
        g = jnp.tanh(gates[:, 2 * H:3 * H])
        o = jax.nn.sigmoid(gates[:, 3 * H:4 * H])
        c = f * c + i * g
        h = o * jnp.tanh(c)
    return h @ p["w_out_row"].T + p["b_out"]


# ----------------------------------------------------------------------------
# Deterministic parameter init (shapes from nn.LSTM(input_size, H, 1) + nn.Linear(H, 1))
# ----------------------------------------------------------------------------
def init_params(key, input_size, hidden):
    k = jax.random.split(key, 6)
    bound = 1.0 / jnp.sqrt(hidden)
    w_ih = jax.random.uniform(k[0], (4 * hidden, input_size), jnp.float32, -bound, bound)
    w_hh = jax.random.uniform(k[1], (4 * hidden, hidden), jnp.float32, -bound, bound)
    b_ih = jax.random.uniform(k[2], (4 * hidden,), jnp.float32, -bound, bound)
    b_hh = jax.random.uniform(k[3], (4 * hidden,), jnp.float32, -bound, bound)
    w_out = jax.random.uniform(k[4], (1, hidden), jnp.float32, -bound, bound)
    b_out = jax.random.uniform(k[5], (1,), jnp.float32, -bound, bound)
    return {
        "w_ih_t": w_ih.T,                     # (D, 4H)
        "w_hh_t": w_hh.T,                     # (H, 4H)
        "b": (b_ih + b_hh).reshape(1, -1),    # (1, 4H)
        "w_out_row": w_out,                   # (1, H)  — used as a broadcast row
        "b_out": b_out.reshape(1, 1),         # (1, 1)
    }


if __name__ == "__main__":
    # Small shapes consistent with the module's forward:
    # x: (batch=2, seq=8, input_size=4), hidden_nodes_per_layer=32, hidden_layers=1
    B, T, D, H = 2, 8, 4, 32

    key = jax.random.PRNGKey(0)
    k_x, k_h0, k_c0, k_p = jax.random.split(key, 4)

    x = jax.random.normal(k_x, (B, T, D), jnp.float32)
    # forward() draws h0/c0 from randn each call; generated deterministically here.
    h0 = jax.random.normal(k_h0, (B, H), jnp.float32)
    c0 = jax.random.normal(k_c0, (B, H), jnp.float32)
    params = init_params(k_p, D, H)

    out = lstm_forward(x, h0, c0, params)
    out = jax.block_until_ready(out)

    ref = lstm_ref(x, h0, c0, params)
    assert out.shape == (B, 1)
    assert jnp.allclose(out, ref, atol=1e-5, rtol=1e-5), (out, ref)

    print("KERNEL_OK")
</pallas_src>

<mosaic_0001>
module attributes {stable_mosaic.version = 11 : i64} {
  func.func @input_proj_kernel(%arg0: memref<16x4xf32, #tpu.memory_space<vmem>>, %arg1: memref<4x128xf32, #tpu.memory_space<vmem>>, %arg2: memref<1x128xf32, #tpu.memory_space<vmem>>, %arg3: memref<16x128xf32, #tpu.memory_space<vmem>>) attributes {dimension_semantics = [], scalar_prefetch = 0 : i64, scratch_operands = 0 : i64, tpu.core_type = #tpu.core_type<tc>} {
    %c0 = arith.constant 0 : index
    %c0_0 = arith.constant 0 : index
    %0 = vector.load %arg0[%c0, %c0_0] : memref<16x4xf32, #tpu.memory_space<vmem>>, vector<16x4xf32>
    %c0_1 = arith.constant 0 : index
    %c0_2 = arith.constant 0 : index
    %1 = vector.load %arg1[%c0_1, %c0_2] : memref<4x128xf32, #tpu.memory_space<vmem>>, vector<4x128xf32>
    %cst = arith.constant dense<0.000000e+00> : vector<16x128xf32>
    %2 = tpu.matmul %0, %1, %cst {dimension_numbers = #tpu.dot_dimension_numbers<[1], [0], [0], [1], [0, 0, 1, 1], [], []>} : vector<16x4xf32>, vector<4x128xf32>, vector<16x128xf32> -> vector<16x128xf32>
    %c0_3 = arith.constant 0 : index
    %c0_4 = arith.constant 0 : index
    %3 = vector.load %arg2[%c0_3, %c0_4] : memref<1x128xf32, #tpu.memory_space<vmem>>, vector<1x128xf32>
    %4 = vector.broadcast %3 : vector<1x128xf32> to vector<16x128xf32>
    %5 = arith.addf %2, %4 : vector<16x128xf32>
    %c0_5 = arith.constant 0 : index
    %c0_6 = arith.constant 0 : index
    %6 = vector.load %arg3[%c0_5, %c0_6] : memref<16x128xf32, #tpu.memory_space<vmem>>, vector<16x128xf32>
    tpu.vector_store %arg3[%c0_5, %c0_6], %5 {strides = array<i32>} : memref<16x128xf32, #tpu.memory_space<vmem>>, vector<16x128xf32>,
    return
  }
}

</mosaic_0001>

<bundles_post_ra>
// kernel: tpu_custom_call.1
= control target key start
LH: loop header
LB: loop body
LE: loop exit
PB: predicated region body
PF: predicated region fallthrough
CT: control target
= control target key end

     0   :  { %vm29_vm0 = vcmask 1043456   ;;  %vm22_vm1 = vcmask 31744   ;;  %s148_s0 = inlined_call_operand.vmem [shape: f32[16,4], index: 0, kind: input, shape index: {}]   ;;  %s149_s1 = inlined_call_operand.vmem [shape: f32[4,128], index: 1, kind: input, shape index: {}]   ;;  %s150_s2 = inlined_call_operand.vmem [shape: f32[1,128], index: 2, kind: input, shape index: {}]   ;;  %s151_s3 = inlined_call_operand.hbm [shape: f32[16,128], index: 3, kind: output, shape index: {}]  }
   0x1   :  { %v17_v0 = vld [vmem:[%s149_s1] sm:$0xf]  ;;  %v16_v2 = vld [vmem:[%s148_s0 + $0x8] sm:$0xff] }
   0x2   :  { %v15_v1 = vld [vmem:[%s148_s0] sm:$0xff]  ;;  %76 = vmatpush.msk.msra.mxu0 %vm29_vm0, %v17_v0  ;;  %79 = vmatpush.msk.msra.mxu1 %vm29_vm0, %v17_v0 }
   0x3   :  { %8 = vsyncpa [#allocation3], 0  ;;  %77 = vmatmul.msk.f32.vlgmr.msra.gmra.mxu0 %vm22_vm1, %v15_v1  ;;  %78 = vmatmul.msk.f32.vlgmr.msra.gmra.mxu1 %vm22_vm1, %v16_v2  ;;  %v83_v3 = vld [vmem:[%s150_s2] ss:$0 sm:$0xff]  ;;  %s110_s1 = smov [#allocation2]   ;;  %s64_s23 = sshll.u32 %s151_s3, 4  ;;  %s65_s23 = int_to_ptr.hbm [resolvable:$true] %s64_s23 }
   0x4   :  { %s62_s20 = sshll.u32 %s110_s1, 4  ;;  %s111_s0 = smov 128   ;;  %s63_s20 = int_to_ptr.vmem [resolvable:$true] %s62_s20 }
   0x5   :  { %s112_s24 = smov 8  }
  0x80   :  { %v50_v4 = vpop.f32.mrf.mxu0  ;;  %v53_v5 = vpop.f32.mrf.mxu1 }
  0x81   :  { %v51_v6 = vadd.f32 %v83_v3, %v50_v4  ;;  %v54_v7 = vadd.f32 %v83_v3, %v53_v5 }
  0x83   :  { %56 = vst [vmem:[#allocation2] sm:$0xff] %v51_v6 }
  0x84   :  { %57 = vst [vmem:[#allocation2 + $0x8] sm:$0xff] %v54_v7 }
  0x85   :  { %70 = dma.vmem_to_hbm [thread:$0]  %s63_s20, 256, %s65_s23, [#allocation3], %s111_s0, %s111_s0, %s112_s24  }
  0x86   :  { %108 = dma.done.wait [#allocation3], 256  }
  0x87   :  { %109 = vsyncadd [#allocation3], 4294967040 }
  0x88   :  { %75 = vsyncpa [#allocation3], 1 }

</bundles_post_ra>
